<compile_context>
chip_gen: v7x
topology: tpu7x:2x2x1
jax: 0.10.0
libtpu: 0.0.40
codegen_flags: <defaults>
</compile_context>

<pallas_src>
import math
import functools

import jax
import jax.numpy as jnp
from jax import lax
from jax.experimental import pallas as pl
from jax.experimental.pallas import tpu as pltpu


# ---------------------------------------------------------------------------
# Kernel: one grid step == one batch tile (BT sequences, rows = BT * S).
# ---------------------------------------------------------------------------
def encoder_block_kernel(
    x_ref,        # (BT, S, E) f32
    wqkv_ref,     # (E, 3E)    bf16   fused [Wq | Wk | Wv]
    bqkv_ref,     # (1, 3E)    f32
    wo_ref,       # (E, E)     bf16
    bo_ref,       # (1, E)     f32
    ln_ref,       # (4, E)     f32    rows: [gamma1, beta1, gamma2, beta2]
    w1_ref,       # (E, F)     bf16
    b1_ref,       # (1, F)     f32
    w2_ref,       # (F, E)     bf16
    b2_ref,       # (1, E)     f32
    o_ref,        # (BT, S, E) f32
    *, batch_tile, seq_len, num_heads, head_dim, ff_chunk, ff_dim,
):
    f32 = jnp.float32
    bf16 = jnp.bfloat16
    E = num_heads * head_dim
    rows = batch_tile * seq_len
    scale = 1.0 / math.sqrt(head_dim)
    eps = 1e-5

    x = x_ref[...].reshape(rows, E)                   # f32, kept for residual
    x_bf = x.astype(bf16)

    # ---- fused QKV projection (one MXU pass); bias in f32, cast immediately
    # so the f32 (rows, 3E) value dies before attention.
    qkv = (jnp.dot(x_bf, wqkv_ref[...], preferred_element_type=f32)
           + bqkv_ref[...]).astype(bf16)              # (rows, 3E) bf16

    # ---- multi-head attention with Wo folded into the per-head sum --------
    attended = jnp.zeros((rows, E), f32)
    for h in range(num_heads):
        lo = h * head_dim
        q = qkv[:, lo:lo + head_dim].reshape(batch_tile, seq_len, head_dim)
        k = qkv[:, E + lo:E + lo + head_dim].reshape(batch_tile, seq_len, head_dim)
        v = qkv[:, 2 * E + lo:2 * E + lo + head_dim].reshape(batch_tile, seq_len, head_dim)

        s = jnp.einsum('bqd,bkd->bqk', q, k,
                       preferred_element_type=f32) * scale        # (BT,S,S) f32
        m = jnp.max(s, axis=-1, keepdims=True)
        e = jnp.exp(s - m)
        p = e * pl.reciprocal(jnp.sum(e, axis=-1, keepdims=True), approx=True)
        oh = jnp.einsum('bqk,bkd->bqd', p.astype(bf16), v,
                        preferred_element_type=f32)               # (BT,S,Hd) f32
        # head-concat + output projection fused: attended += oh @ Wo[h]
        attended = attended + jnp.dot(
            oh.reshape(rows, head_dim).astype(bf16),
            wo_ref[lo:lo + head_dim, :],
            preferred_element_type=f32)
    attended = attended + bo_ref[...]

    # ---- residual + LayerNorm1 (f32, biased variance, eps=1e-5 like torch) -
    h1 = x + attended
    mu1 = jnp.mean(h1, axis=-1, keepdims=True)
    var1 = jnp.mean((h1 - mu1) * (h1 - mu1), axis=-1, keepdims=True)
    y1 = (h1 - mu1) * lax.rsqrt(var1 + eps) * ln_ref[0:1, :] + ln_ref[1:2, :]

    # ---- feed-forward: Linear -> ReLU -> Linear, tiled over F ---------------
    y1_bf = y1.astype(bf16)
    n_chunks = ff_dim // ff_chunk if ff_dim % ff_chunk == 0 else 1
    if n_chunks == 1:
        hc = jnp.maximum(
            jnp.dot(y1_bf, w1_ref[...], preferred_element_type=f32) + b1_ref[...],
            0.0)
        ff = jnp.dot(hc.astype(bf16), w2_ref[...], preferred_element_type=f32)
    else:
        def ff_body(c, acc):
            c0 = pl.multiple_of(c * ff_chunk, ff_chunk)
            hcc = jnp.dot(y1_bf, w1_ref[:, pl.ds(c0, ff_chunk)],
                          preferred_element_type=f32) + b1_ref[:, pl.ds(c0, ff_chunk)]
            hcc = jnp.maximum(hcc, 0.0)
            return acc + jnp.dot(hcc.astype(bf16), w2_ref[pl.ds(c0, ff_chunk), :],
                                 preferred_element_type=f32)
        ff = lax.fori_loop(0, n_chunks, ff_body, jnp.zeros((rows, E), f32),
                           unroll=True)
    ff = ff + b2_ref[...]

    # ---- residual + LayerNorm2 ---------------------------------------------
    h2 = y1 + ff
    mu2 = jnp.mean(h2, axis=-1, keepdims=True)
    var2 = jnp.mean((h2 - mu2) * (h2 - mu2), axis=-1, keepdims=True)
    y2 = (h2 - mu2) * lax.rsqrt(var2 + eps) * ln_ref[2:3, :] + ln_ref[3:4, :]

    o_ref[...] = y2.reshape(batch_tile, seq_len, E).astype(o_ref.dtype)


# ---------------------------------------------------------------------------
# Host-side helpers
# ---------------------------------------------------------------------------
def _pick_batch_tile(B, S, target_rows=1024):
    """Pick the batch tile BT.

    Preference order: keep >=2 grid steps (v7x megacore), keep rows <= target
    (per-step VMEM), rows % 256 == 0 (256-wide MXU on v6e/v7x), rows % 128,
    then the largest rows.  BT > 1 only when S % 8 == 0 (clean in-kernel
    (BT*S, E) <-> (BT, S, E) reshapes)."""
    cands = [d for d in range(1, B + 1)
             if B % d == 0 and (d == 1 or S % 8 == 0)]

    def score(d):
        rows = d * S
        return ((B // d) >= 2,
                rows <= max(S, target_rows),
                rows % 256 == 0,
                rows % 128 == 0,
                rows)

    return max(cands, key=score)


def _pick_ff_chunk(F, max_chunk=512):
    if F <= max_chunk:
        return F
    for c in (512, 384, 256, 128):
        if F % c == 0:
            return c
    return F


def pack_params(params):
    """Fuse QKV weights/biases, pack LN params, cast matmul weights to bf16."""
    bf16 = jnp.bfloat16
    return {
        "wqkv": jnp.concatenate([params["wq"], params["wk"], params["wv"]],
                                axis=1).astype(bf16),
        "bqkv": jnp.concatenate([params["bq"], params["bk"], params["bv"]], axis=1),
        "wo": params["wo"].astype(bf16),
        "bo": params["bo"],
        "ln": jnp.concatenate([params["g1"], params["beta1"],
                               params["g2"], params["beta2"]], axis=0),
        "w1": params["w1"].astype(bf16),
        "b1": params["b1"],
        "w2": params["w2"].astype(bf16),
        "b2": params["b2"],
    }


def transformer_encoder_block(x, packed, *, num_heads):
    """x: (B, S, E) float32. packed: output of pack_params."""
    B, S, E = x.shape
    F = packed["w1"].shape[1]
    assert E % num_heads == 0
    head_dim = E // num_heads
    BT = _pick_batch_tile(B, S)
    rows = BT * S
    ff_chunk = _pick_ff_chunk(F)

    kernel = functools.partial(
        encoder_block_kernel,
        batch_tile=BT, seq_len=S, num_heads=num_heads,
        head_dim=head_dim, ff_chunk=ff_chunk, ff_dim=F,
    )

    full = lambda shape: pl.BlockSpec(shape, lambda i, _s=shape: (0,) * len(_s))

    # ---- explicit VMEM budget (weights are resident + pipeline double-buffers
    # every input); sized so v5e's 16 MiB default scoped limit is not the cap
    # and v7x's 64 MiB physical VMEM is not exceeded.
    weights_b = (E * 3 * E + E * E + E * F + F * E) * 2                # bf16
    bias_b = (3 * E + E + 4 * E + F + E) * 4                           # f32
    io_b = rows * E * 4 * 2                                            # x + out tile
    live_b = (rows * 3 * E * 2              # qkv bf16
              + 2 * BT * S * S * 4          # scores + probs (per head, f32)
              + 4 * rows * E * 4            # attended / y1 / ff / y2 (f32)
              + rows * ff_chunk * 6)        # FFN chunk (f32 + bf16)
    need = 2 * (weights_b + bias_b + io_b) + live_b
    try:
        cap = int(getattr(pltpu.get_tpu_info(), "vmem_capacity_bytes", 64 << 20))
    except Exception:
        cap = 64 << 20
    vmem_limit = int(min(cap, max(need * 5 // 4, 32 << 20)))

    out = pl.pallas_call(
        kernel,
        out_shape=jax.ShapeDtypeStruct((B, S, E), jnp.float32),
        grid_spec=pltpu.PrefetchScalarGridSpec(
            num_scalar_prefetch=0,
            grid=(B // BT,),
            in_specs=[
                pl.BlockSpec((BT, S, E), lambda i: (i, 0, 0)),   # x batch tile
                full((E, 3 * E)), full((1, 3 * E)),              # fused qkv proj
                full((E, E)), full((1, E)),                      # output proj
                full((4, E)),                                    # layernorm params
                full((E, F)), full((1, F)),                      # ff linear1
                full((F, E)), full((1, E)),                      # ff linear2
            ],
            out_specs=pl.BlockSpec((BT, S, E), lambda i: (i, 0, 0)),
        ),
        compiler_params=pltpu.CompilerParams(
            dimension_semantics=("parallel",),
            vmem_limit_bytes=vmem_limit,
        ),
    )(
        x,
        packed["wqkv"], packed["bqkv"],
        packed["wo"], packed["bo"],
        packed["ln"],
        packed["w1"], packed["b1"],
        packed["w2"], packed["b2"],
    )
    return out


def init_params(key, embed_dim, ff_dim):
    """Deterministic synthetic parameters. Linear weights stored as (in, out)
    (already transposed w.r.t. torch's (out, in) convention)."""
    ks = jax.random.split(key, 12)
    s = 0.02

    def lin(k, n_in, n_out):
        return s * jax.random.normal(k, (n_in, n_out), jnp.float32)

    E, F = embed_dim, ff_dim
    return {
        "wq": lin(ks[0], E, E), "bq": s * jax.random.normal(ks[1], (1, E), jnp.float32),
        "wk": lin(ks[2], E, E), "bk": s * jax.random.normal(ks[3], (1, E), jnp.float32),
        "wv": lin(ks[4], E, E), "bv": s * jax.random.normal(ks[5], (1, E), jnp.float32),
        "wo": lin(ks[6], E, E), "bo": s * jax.random.normal(ks[7], (1, E), jnp.float32),
        "g1": jnp.ones((1, E), jnp.float32), "beta1": jnp.zeros((1, E), jnp.float32),
        "w1": lin(ks[8], E, F), "b1": s * jax.random.normal(ks[9], (1, F), jnp.float32),
        "w2": lin(ks[10], F, E), "b2": s * jax.random.normal(ks[11], (1, E), jnp.float32),
        "g2": jnp.ones((1, E), jnp.float32), "beta2": jnp.zeros((1, E), jnp.float32),
    }


def reference_forward(x, params, *, num_heads):
    """Pure-JAX f32 reference mirroring the PyTorch module (eval mode)."""
    B, S, E = x.shape
    Hd = E // num_heads

    def lin(v, w, b):
        return v @ w + b[0]

    Q = lin(x, params["wq"], params["bq"]).reshape(B, S, num_heads, Hd).transpose(0, 2, 1, 3)
    K = lin(x, params["wk"], params["bk"]).reshape(B, S, num_heads, Hd).transpose(0, 2, 1, 3)
    V = lin(x, params["wv"], params["bv"]).reshape(B, S, num_heads, Hd).transpose(0, 2, 1, 3)
    s = jnp.einsum('bhqd,bhkd->bhqk', Q, K) / math.sqrt(Hd)
    p = jax.nn.softmax(s, axis=-1)
    o = jnp.einsum('bhqk,bhkd->bhqd', p, V).transpose(0, 2, 1, 3).reshape(B, S, E)
    attended = lin(o, params["wo"], params["bo"])

    def ln_(v, g, b):
        mu = v.mean(-1, keepdims=True)
        var = ((v - mu) ** 2).mean(-1, keepdims=True)
        return (v - mu) / jnp.sqrt(var + 1e-5) * g[0] + b[0]

    y1 = ln_(x + attended, params["g1"], params["beta1"])
    ff = jnp.maximum(lin(y1, params["w1"], params["b1"]), 0.0)
    ff = lin(ff, params["w2"], params["b2"])
    return ln_(y1 + ff, params["g2"], params["beta2"])


if __name__ == "__main__":
    # Small, module-consistent shapes: batch=2, seq=8, embed_dim=32, heads=4, ff_dim=64.
    B, S, E, H, FF = 2, 8, 32, 4, 64

    key = jax.random.PRNGKey(0)
    kx, kp = jax.random.split(key)
    x = jax.random.normal(kx, (B, S, E), jnp.float32)
    params = init_params(kp, E, FF)
    packed = pack_params(params)

    out = transformer_encoder_block(x, packed, num_heads=H)
    out = jax.block_until_ready(out)

    assert out.shape == (B, S, E)
    assert bool(jnp.all(jnp.isfinite(out)))

    ref = reference_forward(x, params, num_heads=H)
    err = float(jnp.max(jnp.abs(out - ref)))
    assert err < 5e-2, f"max abs error vs reference: {err}"

    print("KERNEL_OK")
</pallas_src>

<mosaic_0001>
module attributes {stable_mosaic.version = 11 : i64} {
  func.func @encoder_block_kernel(%arg0: i32, %arg1: memref<1x8x32xf32, #tpu.memory_space<vmem>>, %arg2: memref<32x96xbf16, #tpu.memory_space<vmem>>, %arg3: memref<1x96xf32, #tpu.memory_space<vmem>>, %arg4: memref<32x32xbf16, #tpu.memory_space<vmem>>, %arg5: memref<1x32xf32, #tpu.memory_space<vmem>>, %arg6: memref<4x32xf32, #tpu.memory_space<vmem>>, %arg7: memref<32x64xbf16, #tpu.memory_space<vmem>>, %arg8: memref<1x64xf32, #tpu.memory_space<vmem>>, %arg9: memref<64x32xbf16, #tpu.memory_space<vmem>>, %arg10: memref<1x32xf32, #tpu.memory_space<vmem>>, %arg11: memref<1x8x32xf32, #tpu.memory_space<vmem>>) attributes {dimension_semantics = [#tpu.dimension_semantics<parallel>], iteration_bounds = array<i64: 2>, scalar_prefetch = 0 : i64, scratch_operands = 0 : i64, tpu.core_type = #tpu.core_type<tc>, window_params = [{transform_indices = @transform_0, window_bounds = array<i64: 1, 8, 32>}, {pipeline_mode = #tpu.pipeline_mode<synchronous>, transform_indices = @transform_1, window_bounds = array<i64: 32, 96>}, {pipeline_mode = #tpu.pipeline_mode<synchronous>, transform_indices = @transform_2, window_bounds = array<i64: 1, 96>}, {pipeline_mode = #tpu.pipeline_mode<synchronous>, transform_indices = @transform_3, window_bounds = array<i64: 32, 32>}, {pipeline_mode = #tpu.pipeline_mode<synchronous>, transform_indices = @transform_4, window_bounds = array<i64: 1, 32>}, {pipeline_mode = #tpu.pipeline_mode<synchronous>, transform_indices = @transform_5, window_bounds = array<i64: 4, 32>}, {pipeline_mode = #tpu.pipeline_mode<synchronous>, transform_indices = @transform_6, window_bounds = array<i64: 32, 64>}, {pipeline_mode = #tpu.pipeline_mode<synchronous>, transform_indices = @transform_7, window_bounds = array<i64: 1, 64>}, {pipeline_mode = #tpu.pipeline_mode<synchronous>, transform_indices = @transform_8, window_bounds = array<i64: 64, 32>}, {pipeline_mode = #tpu.pipeline_mode<synchronous>, transform_indices = @transform_9, window_bounds = array<i64: 1, 32>}, {transform_indices = @transform_10, window_bounds = array<i64: 1, 8, 32>}]} {
    %c0 = arith.constant 0 : index
    %c0_0 = arith.constant 0 : index
    %c0_1 = arith.constant 0 : index
    %0 = vector.load %arg1[%c0, %c0_0, %c0_1] : memref<1x8x32xf32, #tpu.memory_space<vmem>>, vector<1x8x32xf32>
    %1 = vector.shape_cast %0 : vector<1x8x32xf32> to vector<8x32xf32>
    %2 = arith.truncf %1 : vector<8x32xf32> to vector<8x32xbf16>
    %c0_2 = arith.constant 0 : index
    %c0_3 = arith.constant 0 : index
    %3 = vector.load %arg2[%c0_2, %c0_3] : memref<32x96xbf16, #tpu.memory_space<vmem>>, vector<32x96xbf16>
    %cst = arith.constant dense<0.000000e+00> : vector<8x96xf32>
    %4 = tpu.matmul %2, %3, %cst {dimension_numbers = #tpu.dot_dimension_numbers<[1], [0], [0], [1], [0, 0, 1, 1], [], []>} : vector<8x32xbf16>, vector<32x96xbf16>, vector<8x96xf32> -> vector<8x96xf32>
    %c0_4 = arith.constant 0 : index
    %c0_5 = arith.constant 0 : index
    %5 = vector.load %arg3[%c0_4, %c0_5] : memref<1x96xf32, #tpu.memory_space<vmem>>, vector<1x96xf32>
    %6 = vector.broadcast %5 : vector<1x96xf32> to vector<8x96xf32>
    %7 = arith.addf %4, %6 : vector<8x96xf32>
    %8 = arith.truncf %7 : vector<8x96xf32> to vector<8x96xbf16>
    %cst_6 = arith.constant 0.000000e+00 : f32
    %9 = vector.broadcast %cst_6 : f32 to vector<8x32xf32>
    %10 = vector.extract_strided_slice %8 {offsets = [0, 0], sizes = [8, 8], strides = [1, 1]} : vector<8x96xbf16> to vector<8x8xbf16>
    %11 = vector.shape_cast %10 : vector<8x8xbf16> to vector<1x8x8xbf16>
    %12 = vector.extract_strided_slice %8 {offsets = [0, 32], sizes = [8, 8], strides = [1, 1]} : vector<8x96xbf16> to vector<8x8xbf16>
    %13 = vector.shape_cast %12 : vector<8x8xbf16> to vector<1x8x8xbf16>
    %14 = vector.extract_strided_slice %8 {offsets = [0, 64], sizes = [8, 8], strides = [1, 1]} : vector<8x96xbf16> to vector<8x8xbf16>
    %15 = vector.shape_cast %14 : vector<8x8xbf16> to vector<1x8x8xbf16>
    "tpu.trace_start"() <{level = 10 : i32, message = "bqd,bkd->bqk"}> : () -> ()
    %cst_7 = arith.constant dense<0.000000e+00> : vector<1x8x8xf32>
    %16 = tpu.matmul %11, %13, %cst_7 {dimension_numbers = #tpu.dot_dimension_numbers<[2], [2], [1], [1], [0, 0, 0, 1, 1, 1], [0], [0]>} : vector<1x8x8xbf16>, vector<1x8x8xbf16>, vector<1x8x8xf32> -> vector<1x8x8xf32>
    "tpu.trace_stop"() : () -> ()
    %cst_8 = arith.constant 0.353553385 : f32
    %17 = vector.broadcast %cst_8 : f32 to vector<1x8x8xf32>
    %18 = arith.mulf %16, %17 : vector<1x8x8xf32>
    %cst_9 = arith.constant dense<0xFF800000> : vector<1x8xf32>
    %19 = vector.multi_reduction <maximumf>, %18, %cst_9 [2] : vector<1x8x8xf32> to vector<1x8xf32>
    %20 = vector.shape_cast %19 : vector<1x8xf32> to vector<1x8x1xf32>
    %21 = vector.broadcast %20 : vector<1x8x1xf32> to vector<1x8x8xf32>
    %22 = arith.subf %18, %21 : vector<1x8x8xf32>
    %23 = math.exp %22 : vector<1x8x8xf32>
    %cst_10 = arith.constant dense<0.000000e+00> : vector<1x8xf32>
    %24 = vector.multi_reduction <add>, %23, %cst_10 [2] : vector<1x8x8xf32> to vector<1x8xf32>
    %25 = vector.shape_cast %24 : vector<1x8xf32> to vector<1x8x1xf32>
    %26 = tpu.reciprocal %25 {approx = true} : vector<1x8x1xf32> -> vector<1x8x1xf32>
    %27 = vector.broadcast %26 : vector<1x8x1xf32> to vector<1x8x8xf32>
    %28 = arith.mulf %23, %27 : vector<1x8x8xf32>
    %29 = arith.truncf %28 : vector<1x8x8xf32> to vector<1x8x8xbf16>
    "tpu.trace_start"() <{level = 10 : i32, message = "bqk,bkd->bqd"}> : () -> ()
    %cst_11 = arith.constant dense<0.000000e+00> : vector<1x8x8xf32>
    %30 = tpu.matmul %29, %15, %cst_11 {dimension_numbers = #tpu.dot_dimension_numbers<[2], [1], [1], [2], [0, 0, 0, 1, 1, 2], [0], [0]>} : vector<1x8x8xbf16>, vector<1x8x8xbf16>, vector<1x8x8xf32> -> vector<1x8x8xf32>
    "tpu.trace_stop"() : () -> ()
    %31 = vector.shape_cast %30 : vector<1x8x8xf32> to vector<8x8xf32>
    %32 = arith.truncf %31 : vector<8x8xf32> to vector<8x8xbf16>
    %c0_12 = arith.constant 0 : index
    %c0_13 = arith.constant 0 : index
    %33 = vector.load %arg4[%c0_12, %c0_13] : memref<32x32xbf16, #tpu.memory_space<vmem>>, vector<8x32xbf16>
    %cst_14 = arith.constant dense<0.000000e+00> : vector<8x32xf32>
    %34 = tpu.matmul %32, %33, %cst_14 {dimension_numbers = #tpu.dot_dimension_numbers<[1], [0], [0], [1], [0, 0, 1, 1], [], []>} : vector<8x8xbf16>, vector<8x32xbf16>, vector<8x32xf32> -> vector<8x32xf32>
    %35 = arith.addf %9, %34 : vector<8x32xf32>
    %36 = vector.extract_strided_slice %8 {offsets = [0, 8], sizes = [8, 8], strides = [1, 1]} : vector<8x96xbf16> to vector<8x8xbf16>
    %37 = vector.shape_cast %36 : vector<8x8xbf16> to vector<1x8x8xbf16>
    %38 = vector.extract_strided_slice %8 {offsets = [0, 40], sizes = [8, 8], strides = [1, 1]} : vector<8x96xbf16> to vector<8x8xbf16>
    %39 = vector.shape_cast %38 : vector<8x8xbf16> to vector<1x8x8xbf16>
    %40 = vector.extract_strided_slice %8 {offsets = [0, 72], sizes = [8, 8], strides = [1, 1]} : vector<8x96xbf16> to vector<8x8xbf16>
    %41 = vector.shape_cast %40 : vector<8x8xbf16> to vector<1x8x8xbf16>
    "tpu.trace_start"() <{level = 10 : i32, message = "bqd,bkd->bqk"}> : () -> ()
    %cst_15 = arith.constant dense<0.000000e+00> : vector<1x8x8xf32>
    %42 = tpu.matmul %37, %39, %cst_15 {dimension_numbers = #tpu.dot_dimension_numbers<[2], [2], [1], [1], [0, 0, 0, 1, 1, 1], [0], [0]>} : vector<1x8x8xbf16>, vector<1x8x8xbf16>, vector<1x8x8xf32> -> vector<1x8x8xf32>
    "tpu.trace_stop"() : () -> ()
    %cst_16 = arith.constant 0.353553385 : f32
    %43 = vector.broadcast %cst_16 : f32 to vector<1x8x8xf32>
    %44 = arith.mulf %42, %43 : vector<1x8x8xf32>
    %cst_17 = arith.constant dense<0xFF800000> : vector<1x8xf32>
    %45 = vector.multi_reduction <maximumf>, %44, %cst_17 [2] : vector<1x8x8xf32> to vector<1x8xf32>
    %46 = vector.shape_cast %45 : vector<1x8xf32> to vector<1x8x1xf32>
    %47 = vector.broadcast %46 : vector<1x8x1xf32> to vector<1x8x8xf32>
    %48 = arith.subf %44, %47 : vector<1x8x8xf32>
    %49 = math.exp %48 : vector<1x8x8xf32>
    %cst_18 = arith.constant dense<0.000000e+00> : vector<1x8xf32>
    %50 = vector.multi_reduction <add>, %49, %cst_18 [2] : vector<1x8x8xf32> to vector<1x8xf32>
    %51 = vector.shape_cast %50 : vector<1x8xf32> to vector<1x8x1xf32>
    %52 = tpu.reciprocal %51 {approx = true} : vector<1x8x1xf32> -> vector<1x8x1xf32>
    %53 = vector.broadcast %52 : vector<1x8x1xf32> to vector<1x8x8xf32>
    %54 = arith.mulf %49, %53 : vector<1x8x8xf32>
    %55 = arith.truncf %54 : vector<1x8x8xf32> to vector<1x8x8xbf16>
    "tpu.trace_start"() <{level = 10 : i32, message = "bqk,bkd->bqd"}> : () -> ()
    %cst_19 = arith.constant dense<0.000000e+00> : vector<1x8x8xf32>
    %56 = tpu.matmul %55, %41, %cst_19 {dimension_numbers = #tpu.dot_dimension_numbers<[2], [1], [1], [2], [0, 0, 0, 1, 1, 2], [0], [0]>} : vector<1x8x8xbf16>, vector<1x8x8xbf16>, vector<1x8x8xf32> -> vector<1x8x8xf32>
    "tpu.trace_stop"() : () -> ()
    %57 = vector.shape_cast %56 : vector<1x8x8xf32> to vector<8x8xf32>
    %58 = arith.truncf %57 : vector<8x8xf32> to vector<8x8xbf16>
    %c8 = arith.constant 8 : index
    %c0_20 = arith.constant 0 : index
    %59 = vector.load %arg4[%c8, %c0_20] : memref<32x32xbf16, #tpu.memory_space<vmem>>, vector<8x32xbf16>
    %cst_21 = arith.constant dense<0.000000e+00> : vector<8x32xf32>
    %60 = tpu.matmul %58, %59, %cst_21 {dimension_numbers = #tpu.dot_dimension_numbers<[1], [0], [0], [1], [0, 0, 1, 1], [], []>} : vector<8x8xbf16>, vector<8x32xbf16>, vector<8x32xf32> -> vector<8x32xf32>
    %61 = arith.addf %35, %60 : vector<8x32xf32>
    %62 = vector.extract_strided_slice %8 {offsets = [0, 16], sizes = [8, 8], strides = [1, 1]} : vector<8x96xbf16> to vector<8x8xbf16>
    %63 = vector.shape_cast %62 : vector<8x8xbf16> to vector<1x8x8xbf16>
    %64 = vector.extract_strided_slice %8 {offsets = [0, 48], sizes = [8, 8], strides = [1, 1]} : vector<8x96xbf16> to vector<8x8xbf16>
    %65 = vector.shape_cast %64 : vector<8x8xbf16> to vector<1x8x8xbf16>
    %66 = vector.extract_strided_slice %8 {offsets = [0, 80], sizes = [8, 8], strides = [1, 1]} : vector<8x96xbf16> to vector<8x8xbf16>
    %67 = vector.shape_cast %66 : vector<8x8xbf16> to vector<1x8x8xbf16>
    "tpu.trace_start"() <{level = 10 : i32, message = "bqd,bkd->bqk"}> : () -> ()
    %cst_22 = arith.constant dense<0.000000e+00> : vector<1x8x8xf32>
    %68 = tpu.matmul %63, %65, %cst_22 {dimension_numbers = #tpu.dot_dimension_numbers<[2], [2], [1], [1], [0, 0, 0, 1, 1, 1], [0], [0]>} : vector<1x8x8xbf16>, vector<1x8x8xbf16>, vector<1x8x8xf32> -> vector<1x8x8xf32>
    "tpu.trace_stop"() : () -> ()
    %cst_23 = arith.constant 0.353553385 : f32
    %69 = vector.broadcast %cst_23 : f32 to vector<1x8x8xf32>
    %70 = arith.mulf %68, %69 : vector<1x8x8xf32>
    %cst_24 = arith.constant dense<0xFF800000> : vector<1x8xf32>
    %71 = vector.multi_reduction <maximumf>, %70, %cst_24 [2] : vector<1x8x8xf32> to vector<1x8xf32>
    %72 = vector.shape_cast %71 : vector<1x8xf32> to vector<1x8x1xf32>
    %73 = vector.broadcast %72 : vector<1x8x1xf32> to vector<1x8x8xf32>
    %74 = arith.subf %70, %73 : vector<1x8x8xf32>
    %75 = math.exp %74 : vector<1x8x8xf32>
    %cst_25 = arith.constant dense<0.000000e+00> : vector<1x8xf32>
    %76 = vector.multi_reduction <add>, %75, %cst_25 [2] : vector<1x8x8xf32> to vector<1x8xf32>
    %77 = vector.shape_cast %76 : vector<1x8xf32> to vector<1x8x1xf32>
    %78 = tpu.reciprocal %77 {approx = true} : vector<1x8x1xf32> -> vector<1x8x1xf32>
    %79 = vector.broadcast %78 : vector<1x8x1xf32> to vector<1x8x8xf32>
    %80 = arith.mulf %75, %79 : vector<1x8x8xf32>
    %81 = arith.truncf %80 : vector<1x8x8xf32> to vector<1x8x8xbf16>
    "tpu.trace_start"() <{level = 10 : i32, message = "bqk,bkd->bqd"}> : () -> ()
    %cst_26 = arith.constant dense<0.000000e+00> : vector<1x8x8xf32>
    %82 = tpu.matmul %81, %67, %cst_26 {dimension_numbers = #tpu.dot_dimension_numbers<[2], [1], [1], [2], [0, 0, 0, 1, 1, 2], [0], [0]>} : vector<1x8x8xbf16>, vector<1x8x8xbf16>, vector<1x8x8xf32> -> vector<1x8x8xf32>
    "tpu.trace_stop"() : () -> ()
    %83 = vector.shape_cast %82 : vector<1x8x8xf32> to vector<8x8xf32>
    %84 = arith.truncf %83 : vector<8x8xf32> to vector<8x8xbf16>
    %c16 = arith.constant 16 : index
    %c0_27 = arith.constant 0 : index
    %85 = vector.load %arg4[%c16, %c0_27] : memref<32x32xbf16, #tpu.memory_space<vmem>>, vector<8x32xbf16>
    %cst_28 = arith.constant dense<0.000000e+00> : vector<8x32xf32>
    %86 = tpu.matmul %84, %85, %cst_28 {dimension_numbers = #tpu.dot_dimension_numbers<[1], [0], [0], [1], [0, 0, 1, 1], [], []>} : vector<8x8xbf16>, vector<8x32xbf16>, vector<8x32xf32> -> vector<8x32xf32>
    %87 = arith.addf %61, %86 : vector<8x32xf32>
    %88 = vector.extract_strided_slice %8 {offsets = [0, 24], sizes = [8, 8], strides = [1, 1]} : vector<8x96xbf16> to vector<8x8xbf16>
    %89 = vector.shape_cast %88 : vector<8x8xbf16> to vector<1x8x8xbf16>
    %90 = vector.extract_strided_slice %8 {offsets = [0, 56], sizes = [8, 8], strides = [1, 1]} : vector<8x96xbf16> to vector<8x8xbf16>
    %91 = vector.shape_cast %90 : vector<8x8xbf16> to vector<1x8x8xbf16>
    %92 = vector.extract_strided_slice %8 {offsets = [0, 88], sizes = [8, 8], strides = [1, 1]} : vector<8x96xbf16> to vector<8x8xbf16>
    %93 = vector.shape_cast %92 : vector<8x8xbf16> to vector<1x8x8xbf16>
    "tpu.trace_start"() <{level = 10 : i32, message = "bqd,bkd->bqk"}> : () -> ()
    %cst_29 = arith.constant dense<0.000000e+00> : vector<1x8x8xf32>
    %94 = tpu.matmul %89, %91, %cst_29 {dimension_numbers = #tpu.dot_dimension_numbers<[2], [2], [1], [1], [0, 0, 0, 1, 1, 1], [0], [0]>} : vector<1x8x8xbf16>, vector<1x8x8xbf16>, vector<1x8x8xf32> -> vector<1x8x8xf32>
    "tpu.trace_stop"() : () -> ()
    %cst_30 = arith.constant 0.353553385 : f32
    %95 = vector.broadcast %cst_30 : f32 to vector<1x8x8xf32>
    %96 = arith.mulf %94, %95 : vector<1x8x8xf32>
    %cst_31 = arith.constant dense<0xFF800000> : vector<1x8xf32>
    %97 = vector.multi_reduction <maximumf>, %96, %cst_31 [2] : vector<1x8x8xf32> to vector<1x8xf32>
    %98 = vector.shape_cast %97 : vector<1x8xf32> to vector<1x8x1xf32>
    %99 = vector.broadcast %98 : vector<1x8x1xf32> to vector<1x8x8xf32>
    %100 = arith.subf %96, %99 : vector<1x8x8xf32>
    %101 = math.exp %100 : vector<1x8x8xf32>
    %cst_32 = arith.constant dense<0.000000e+00> : vector<1x8xf32>
    %102 = vector.multi_reduction <add>, %101, %cst_32 [2] : vector<1x8x8xf32> to vector<1x8xf32>
    %103 = vector.shape_cast %102 : vector<1x8xf32> to vector<1x8x1xf32>
    %104 = tpu.reciprocal %103 {approx = true} : vector<1x8x1xf32> -> vector<1x8x1xf32>
    %105 = vector.broadcast %104 : vector<1x8x1xf32> to vector<1x8x8xf32>
    %106 = arith.mulf %101, %105 : vector<1x8x8xf32>
    %107 = arith.truncf %106 : vector<1x8x8xf32> to vector<1x8x8xbf16>
    "tpu.trace_start"() <{level = 10 : i32, message = "bqk,bkd->bqd"}> : () -> ()
    %cst_33 = arith.constant dense<0.000000e+00> : vector<1x8x8xf32>
    %108 = tpu.matmul %107, %93, %cst_33 {dimension_numbers = #tpu.dot_dimension_numbers<[2], [1], [1], [2], [0, 0, 0, 1, 1, 2], [0], [0]>} : vector<1x8x8xbf16>, vector<1x8x8xbf16>, vector<1x8x8xf32> -> vector<1x8x8xf32>
    "tpu.trace_stop"() : () -> ()
    %109 = vector.shape_cast %108 : vector<1x8x8xf32> to vector<8x8xf32>
    %110 = arith.truncf %109 : vector<8x8xf32> to vector<8x8xbf16>
    %c24 = arith.constant 24 : index
    %c0_34 = arith.constant 0 : index
    %111 = vector.load %arg4[%c24, %c0_34] : memref<32x32xbf16, #tpu.memory_space<vmem>>, vector<8x32xbf16>
    %cst_35 = arith.constant dense<0.000000e+00> : vector<8x32xf32>
    %112 = tpu.matmul %110, %111, %cst_35 {dimension_numbers = #tpu.dot_dimension_numbers<[1], [0], [0], [1], [0, 0, 1, 1], [], []>} : vector<8x8xbf16>, vector<8x32xbf16>, vector<8x32xf32> -> vector<8x32xf32>
    %113 = arith.addf %87, %112 : vector<8x32xf32>
    %c0_36 = arith.constant 0 : index
    %c0_37 = arith.constant 0 : index
    %114 = vector.load %arg5[%c0_36, %c0_37] : memref<1x32xf32, #tpu.memory_space<vmem>>, vector<1x32xf32>
    %115 = vector.broadcast %114 : vector<1x32xf32> to vector<8x32xf32>
    %116 = arith.addf %113, %115 : vector<8x32xf32>
    %117 = arith.addf %1, %116 : vector<8x32xf32>
    %cst_38 = arith.constant dense<0.000000e+00> : vector<8xf32>
    %118 = vector.multi_reduction <add>, %117, %cst_38 [1] : vector<8x32xf32> to vector<8xf32>
    %119 = vector.shape_cast %118 : vector<8xf32> to vector<8x1xf32>
    %cst_39 = arith.constant 3.200000e+01 : f32
    %120 = vector.broadcast %cst_39 : f32 to vector<8x1xf32>
    %121 = arith.divf %119, %120 : vector<8x1xf32>
    %122 = vector.broadcast %121 : vector<8x1xf32> to vector<8x32xf32>
    %123 = arith.subf %117, %122 : vector<8x32xf32>
    %124 = vector.broadcast %121 : vector<8x1xf32> to vector<8x32xf32>
    %125 = arith.subf %117, %124 : vector<8x32xf32>
    %126 = arith.mulf %123, %125 : vector<8x32xf32>
    %cst_40 = arith.constant dense<0.000000e+00> : vector<8xf32>
    %127 = vector.multi_reduction <add>, %126, %cst_40 [1] : vector<8x32xf32> to vector<8xf32>
    %128 = vector.shape_cast %127 : vector<8xf32> to vector<8x1xf32>
    %cst_41 = arith.constant 3.200000e+01 : f32
    %129 = vector.broadcast %cst_41 : f32 to vector<8x1xf32>
    %130 = arith.divf %128, %129 : vector<8x1xf32>
    %131 = vector.broadcast %121 : vector<8x1xf32> to vector<8x32xf32>
    %132 = arith.subf %117, %131 : vector<8x32xf32>
    %cst_42 = arith.constant 9.99999974E-6 : f32
    %133 = vector.broadcast %cst_42 : f32 to vector<8x1xf32>
    %134 = arith.addf %130, %133 : vector<8x1xf32>
    %135 = math.rsqrt %134 : vector<8x1xf32>
    %136 = vector.broadcast %135 : vector<8x1xf32> to vector<8x32xf32>
    %137 = arith.mulf %132, %136 : vector<8x32xf32>
    %c0_43 = arith.constant 0 : index
    %c0_44 = arith.constant 0 : index
    %138 = vector.load %arg6[%c0_43, %c0_44] : memref<4x32xf32, #tpu.memory_space<vmem>>, vector<1x32xf32>
    %139 = vector.broadcast %138 : vector<1x32xf32> to vector<8x32xf32>
    %140 = arith.mulf %137, %139 : vector<8x32xf32>
    %c1 = arith.constant 1 : index
    %c0_45 = arith.constant 0 : index
    %141 = vector.load %arg6[%c1, %c0_45] : memref<4x32xf32, #tpu.memory_space<vmem>>, vector<1x32xf32>
    %142 = vector.broadcast %141 : vector<1x32xf32> to vector<8x32xf32>
    %143 = arith.addf %140, %142 : vector<8x32xf32>
    %144 = arith.truncf %143 : vector<8x32xf32> to vector<8x32xbf16>
    %c0_46 = arith.constant 0 : index
    %c0_47 = arith.constant 0 : index
    %145 = vector.load %arg7[%c0_46, %c0_47] : memref<32x64xbf16, #tpu.memory_space<vmem>>, vector<32x64xbf16>
    %cst_48 = arith.constant dense<0.000000e+00> : vector<8x64xf32>
    %146 = tpu.matmul %144, %145, %cst_48 {dimension_numbers = #tpu.dot_dimension_numbers<[1], [0], [0], [1], [0, 0, 1, 1], [], []>} : vector<8x32xbf16>, vector<32x64xbf16>, vector<8x64xf32> -> vector<8x64xf32>
    %c0_49 = arith.constant 0 : index
    %c0_50 = arith.constant 0 : index
    %147 = vector.load %arg8[%c0_49, %c0_50] : memref<1x64xf32, #tpu.memory_space<vmem>>, vector<1x64xf32>
    %148 = vector.broadcast %147 : vector<1x64xf32> to vector<8x64xf32>
    %149 = arith.addf %146, %148 : vector<8x64xf32>
    %cst_51 = arith.constant 0.000000e+00 : f32
    %150 = vector.broadcast %cst_51 : f32 to vector<8x64xf32>
    %151 = arith.maximumf %149, %150 : vector<8x64xf32>
    %152 = arith.truncf %151 : vector<8x64xf32> to vector<8x64xbf16>
    %c0_52 = arith.constant 0 : index
    %c0_53 = arith.constant 0 : index
    %153 = vector.load %arg9[%c0_52, %c0_53] : memref<64x32xbf16, #tpu.memory_space<vmem>>, vector<64x32xbf16>
    %cst_54 = arith.constant dense<0.000000e+00> : vector<8x32xf32>
    %154 = tpu.matmul %152, %153, %cst_54 {dimension_numbers = #tpu.dot_dimension_numbers<[1], [0], [0], [1], [0, 0, 1, 1], [], []>} : vector<8x64xbf16>, vector<64x32xbf16>, vector<8x32xf32> -> vector<8x32xf32>
    %c0_55 = arith.constant 0 : index
    %c0_56 = arith.constant 0 : index
    %155 = vector.load %arg10[%c0_55, %c0_56] : memref<1x32xf32, #tpu.memory_space<vmem>>, vector<1x32xf32>
    %156 = vector.broadcast %155 : vector<1x32xf32> to vector<8x32xf32>
    %157 = arith.addf %154, %156 : vector<8x32xf32>
    %158 = arith.addf %143, %157 : vector<8x32xf32>
    %cst_57 = arith.constant dense<0.000000e+00> : vector<8xf32>
    %159 = vector.multi_reduction <add>, %158, %cst_57 [1] : vector<8x32xf32> to vector<8xf32>
    %160 = vector.shape_cast %159 : vector<8xf32> to vector<8x1xf32>
    %cst_58 = arith.constant 3.200000e+01 : f32
    %161 = vector.broadcast %cst_58 : f32 to vector<8x1xf32>
    %162 = arith.divf %160, %161 : vector<8x1xf32>
    %163 = vector.broadcast %162 : vector<8x1xf32> to vector<8x32xf32>
    %164 = arith.subf %158, %163 : vector<8x32xf32>
    %165 = vector.broadcast %162 : vector<8x1xf32> to vector<8x32xf32>
    %166 = arith.subf %158, %165 : vector<8x32xf32>
    %167 = arith.mulf %164, %166 : vector<8x32xf32>
    %cst_59 = arith.constant dense<0.000000e+00> : vector<8xf32>
    %168 = vector.multi_reduction <add>, %167, %cst_59 [1] : vector<8x32xf32> to vector<8xf32>
    %169 = vector.shape_cast %168 : vector<8xf32> to vector<8x1xf32>
    %cst_60 = arith.constant 3.200000e+01 : f32
    %170 = vector.broadcast %cst_60 : f32 to vector<8x1xf32>
    %171 = arith.divf %169, %170 : vector<8x1xf32>
    %172 = vector.broadcast %162 : vector<8x1xf32> to vector<8x32xf32>
    %173 = arith.subf %158, %172 : vector<8x32xf32>
    %cst_61 = arith.constant 9.99999974E-6 : f32
    %174 = vector.broadcast %cst_61 : f32 to vector<8x1xf32>
    %175 = arith.addf %171, %174 : vector<8x1xf32>
    %176 = math.rsqrt %175 : vector<8x1xf32>
    %177 = vector.broadcast %176 : vector<8x1xf32> to vector<8x32xf32>
    %178 = arith.mulf %173, %177 : vector<8x32xf32>
    %c2 = arith.constant 2 : index
    %c0_62 = arith.constant 0 : index
    %179 = vector.load %arg6[%c2, %c0_62] : memref<4x32xf32, #tpu.memory_space<vmem>>, vector<1x32xf32>
    %180 = vector.broadcast %179 : vector<1x32xf32> to vector<8x32xf32>
    %181 = arith.mulf %178, %180 : vector<8x32xf32>
    %c3 = arith.constant 3 : index
    %c0_63 = arith.constant 0 : index
    %182 = vector.load %arg6[%c3, %c0_63] : memref<4x32xf32, #tpu.memory_space<vmem>>, vector<1x32xf32>
    %183 = vector.broadcast %182 : vector<1x32xf32> to vector<8x32xf32>
    %184 = arith.addf %181, %183 : vector<8x32xf32>
    %185 = vector.shape_cast %184 : vector<8x32xf32> to vector<1x8x32xf32>
    %c0_64 = arith.constant 0 : index
    %c0_65 = arith.constant 0 : index
    %c0_66 = arith.constant 0 : index
    %186 = vector.load %arg11[%c0_64, %c0_65, %c0_66] : memref<1x8x32xf32, #tpu.memory_space<vmem>>, vector<1x8x32xf32>
    tpu.vector_store %arg11[%c0_64, %c0_65, %c0_66], %185 {strides = array<i32>} : memref<1x8x32xf32, #tpu.memory_space<vmem>>, vector<1x8x32xf32>,
    return
  }
  func.func @transform_0(%arg0: i32) -> (i32, i32, i32) {
    %c0_i32 = arith.constant 0 : i32
    %c0_i32_0 = arith.constant 0 : i32
    %c0_i32_1 = arith.constant 0 : i32
    return %arg0, %c0_i32, %c0_i32_0 : i32, i32, i32
  }
  func.func @transform_1(%arg0: i32) -> (i32, i32) {
    %c0_i32 = arith.constant 0 : i32
    %c0_i32_0 = arith.constant 0 : i32
    %c0_i32_1 = arith.constant 0 : i32
    return %c0_i32, %c0_i32_0 : i32, i32
  }
  func.func @transform_2(%arg0: i32) -> (i32, i32) {
    %c0_i32 = arith.constant 0 : i32
    %c0_i32_0 = arith.constant 0 : i32
    %c0_i32_1 = arith.constant 0 : i32
    return %c0_i32, %c0_i32_0 : i32, i32
  }
  func.func @transform_3(%arg0: i32) -> (i32, i32) {
    %c0_i32 = arith.constant 0 : i32
    %c0_i32_0 = arith.constant 0 : i32
    %c0_i32_1 = arith.constant 0 : i32
    return %c0_i32, %c0_i32_0 : i32, i32
  }
  func.func @transform_4(%arg0: i32) -> (i32, i32) {
    %c0_i32 = arith.constant 0 : i32
    %c0_i32_0 = arith.constant 0 : i32
    %c0_i32_1 = arith.constant 0 : i32
    return %c0_i32, %c0_i32_0 : i32, i32
  }
  func.func @transform_5(%arg0: i32) -> (i32, i32) {
    %c0_i32 = arith.constant 0 : i32
    %c0_i32_0 = arith.constant 0 : i32
    %c0_i32_1 = arith.constant 0 : i32
    return %c0_i32, %c0_i32_0 : i32, i32
  }
  func.func @transform_6(%arg0: i32) -> (i32, i32) {
    %c0_i32 = arith.constant 0 : i32
    %c0_i32_0 = arith.constant 0 : i32
    %c0_i32_1 = arith.constant 0 : i32
    return %c0_i32, %c0_i32_0 : i32, i32
  }
  func.func @transform_7(%arg0: i32) -> (i32, i32) {
    %c0_i32 = arith.constant 0 : i32
    %c0_i32_0 = arith.constant 0 : i32
    %c0_i32_1 = arith.constant 0 : i32
    return %c0_i32, %c0_i32_0 : i32, i32
  }
  func.func @transform_8(%arg0: i32) -> (i32, i32) {
    %c0_i32 = arith.constant 0 : i32
    %c0_i32_0 = arith.constant 0 : i32
    %c0_i32_1 = arith.constant 0 : i32
    return %c0_i32, %c0_i32_0 : i32, i32
  }
  func.func @transform_9(%arg0: i32) -> (i32, i32) {
    %c0_i32 = arith.constant 0 : i32
    %c0_i32_0 = arith.constant 0 : i32
    %c0_i32_1 = arith.constant 0 : i32
    return %c0_i32, %c0_i32_0 : i32, i32
  }
  func.func @transform_10(%arg0: i32) -> (i32, i32, i32) {
    %c0_i32 = arith.constant 0 : i32
    %c0_i32_0 = arith.constant 0 : i32
    %c0_i32_1 = arith.constant 0 : i32
    return %arg0, %c0_i32, %c0_i32_0 : i32, i32, i32
  }
}

</mosaic_0001>

<bundles_post_ra>
// kernel: tpu_custom_call.1
= control target key start
LH: loop header
LB: loop body
LE: loop exit
PB: predicated region body
PF: predicated region fallthrough
CT: control target
= control target key end

     0   :  { %s2118_s0 = inlined_call_operand.vmem [shape: f32[2,8,32], index: 0, kind: input, shape index: {}]   ;;  %s2119_s1 = inlined_call_operand.vmem [shape: bf16[32,96], index: 1, kind: input, shape index: {}]   ;;  %s2120_s2 = inlined_call_operand.vmem [shape: f32[1,96], index: 2, kind: input, shape index: {}]   ;;  %s2121_s3 = inlined_call_operand.vmem [shape: bf16[32,32], index: 3, kind: input, shape index: {}]   ;;  %s2122_s4 = inlined_call_operand.vmem [shape: f32[1,32], index: 4, kind: input, shape index: {}]   ;;  %s2123_s5 = inlined_call_operand.vmem [shape: f32[4,32], index: 5, kind: input, shape index: {}]   ;;  %s2124_s6 = inlined_call_operand.hbm [shape: bf16[32,64], index: 6, kind: input, shape index: {}]   ;;  %s2125_s7 = inlined_call_operand.vmem [shape: f32[1,64], index: 7, kind: input, shape index: {}]   ;;  %s2126_s8 = inlined_call_operand.vmem [shape: bf16[64,32], index: 8, kind: input, shape index: {}]   ;;  %s2127_s9 = inlined_call_operand.vmem [shape: f32[1,32], index: 9, kind: input, shape index: {}]   ;;  %s2128_s10 = inlined_call_operand.hbm [shape: f32[2,8,32], index: 10, kind: output, shape index: {}]  }
   0x1   :  { %2132 = sst [smem:[#allocation8_spill]] %s2118_s0 }
   0x2   :  { %15 = vsyncpa [#allocation3], 0 }
   0x3   :  { %16 = vsyncpa [#allocation4], 0 }
   0x4   :  { %18 = vsyncpa [#allocation4 + $0x1], 0  ;;  %s1818_s13 = smov 0   ;;  %s1820_s14 = smov 0  }
   0x5   :  { %s1822_s15 = smov 0   ;;  %s1824_s16 = smov 0  }
   0x6 LB: > { %s1839_s17 = sadd.s32 4294967295, %s1744_s16   ;;  %s1379_s18 = sadd.s32 4294967294, %s1744_s16   ;;  %s1744_s16 = sphi %s1824_s16, %s2146_s16   ;;  %s1740_s15 = sphi %s1822_s15, %s2145_s15   ;;  %s1736_s14 = sphi %s1820_s14, %s2144_s14   ;;  %s1732_s13 = sphi %s1818_s13, %s2143_s13  }
   0x7   : > { %s1843_s19 = sadd.s32 1, %s1744_s16   ;;  %s246_s20 = sadd.s32 1, %s1740_s15 }
   0x8   : > { %s243_s21 = ssub.s32 %s1744_s16, %s1843_s19  ;;  %p256_p0 = scmp.ne.s32.totalorder %s1740_s15, %s1736_s14 }
   0x9   : > { %p244_p1 = scmp.eq.s32.totalorder %s243_s21, 0  ;;  %p257_p2 = scmp.eq.s32.totalorder %s1839_s17, 1 }
   0xa   : > { %p262_p3 = scmp.ne.s32.totalorder %s1736_s14, %s1732_s13  ;;  %p263_p4 = scmp.eq.s32.totalorder %s1379_s18, 1 }
   0xb   : > { %s1854_s22 = scalar_select %p244_p1, %s1740_s15, %s246_s20  }
   0xc   : > { %p1856_p5 = por %p257_p2, %p256_p0  ;;  %p1860_p6 = por %p263_p4, %p262_p3 }
   0xd   : > { %p1380_p7 = scmp.ge.s32.totalorder %s1744_s16, 1  ;;  %p270_p8 = scmp.lt.s32.totalorder %s1744_s16, 3 }
   0xe   : > { %s2133_s23 = scalar_select %p1856_p5, 1, 0 }
   0xf   : > { %s2134_s24 = scalar_select %p1860_p6, 1, 0 }
  0x10   : > { %p2129_p9 = scmp.eq.s32.totalorder %s1839_s17, 0  ;;  %p1867_p10 = pnand %p1380_p7, %p270_p8 }
  0x11   : > { %s1746_s26 = smov [#allocation2]   ;;  %s1650_s11 = scalar_lea.hbm %s2124_s6, 256 }
  0x12   : > { %s2135_s25 = scalar_select %p1867_p10, 1, 0 }
  0x13   : > { %s297_s27 = sshll.u32 %s1746_s26, 4  ;;  %p1563_p11 = pneg %p1867_p10  ;;  %s298_s27 = int_to_ptr.vmem [resolvable:$true] %s297_s27 }
  0x14   : > { %p1651_p13 = scmp.ne.s32.totalorder %s2124_s6, %s1650_s11  ;;  %p1657_p3 = scmp.lt.u32.totalorder %s1650_s11, %s2124_s6 }
  0x15   : > { %p1875_p12 = pnand %p2129_p9, %p1563_p11 }
  0x17   : > { %p1652_p0 = pneg %p1875_p12 }
  0x19   : > { %p1653_p1 = pnand %p1652_p0, %p1651_p13 }
  0x1b   : > { %p1654_p2 = pneg %p1653_p1 }
  0x1d   : > { %p1659_p4 = pnand %p1657_p3, %p1654_p2 }
  0x1f   : > { %1662 = shalt.err (!%p1659_p4)
}
  0x20   : > { %s1663_s26 = scalar_lea.vmem %s298_s27, 256  ;;  %p1671_p9 = scmp.lt.s32.totalorder %s298_s27, %s298_s27 }
  0x21   : > { %p1664_p7 = scmp.ne.s32.totalorder %s298_s27, %s1663_s26  ;;  %p1672_p6 = scmp.lt.s32.totalorder %s1663_s26, %s1663_s26 }
  0x23   : > { %p1666_p8 = pnand %p1664_p7, %p1652_p0  ;;  %p1673_p5 = por %p1672_p6, %p1671_p9 }
  0x25   : > { %p1667_p11 = pneg %p1666_p8 }
  0x27   : > { %p1674_p10 = pnand %p1673_p5, %p1667_p11 }
  0x29   : > { %1677 = shalt.err (!%p1674_p10)
}
  0x2a   : > { %s1747_s29 = smov 64   ;;  %s1748_s30 = smov 4  }
  0x2b   : > { %1566 = dma.hbm_to_vmem [thread:$0]  (!%p1875_p12), %s2124_s6, 256, %s298_s27, [#allocation3], %s1747_s29, %s1747_s29, %s1748_s30  }
  0x2c   : > { %p2137_p13 = scmp.ne.s32.totalorder %s2135_s25, 0 }
  0x2d   : > { %p2138_p1 = scmp.eq.s32.totalorder (!%p2137_p13), %s1839_s17, 0 }
  0x2e   : > { %329 = sbr.rel (%p2137_p13) target bundleno = 3739 (0xe9b), region = 60 }
  0x35   : > { %1723 = dma.done.wait (%p2138_p1), [#allocation3], 256   ;;  %p2139_p0 = pmov %p2138_p1 }
  0x36   : > { %p366_p5 = scmp.lt.s32.totalorder %s1839_s17, 1  ;;  %v1749_v0 = vmov 0.0   ;;  %vm1750_vm0 = vmmov 0   ;;  %s2140_s0 = sld [smem:[#allocation8_spill]]  ;;  %v1622_v1 = vld [vmem:[%s2119_s1] sm:$0xff]   ;;  %v1623_v2 = vld [vmem:[%s2119_s1 + $0x8] sm:$0xff]  }
  0x37   : > { %1725 = vsyncadd (%p2139_p0), [#allocation3], 4294967040  ;;  %1457 = vmatprep.subr.bf16.mxu1 %v1749_v0  ;;  %1461 = vmatprep.mubr.msk.bf16.mxu1 %vm1750_vm0, %v1749_v0  ;;  %vm396_vm1 = vcmask 261120   ;;  %v1387_v5 = vld [vmem:[%s2120_s2] ss:$0 sm:$0xff]  ;;  %s1753_s28 = smov 88  }
  0x38   : > { %s367_s27 = scalar_select %p366_p5, %s1839_s17, 1  ;;  %1471 = vmatprep.subr.bf16.mxu0 %v1749_v0  ;;  %1473 = vmatprep.mubr.msk.bf16.mxu0 %vm1750_vm0, %v1749_v0  ;;  %vm444_vm2 = vcmask 64512   ;;  %vm509_vm3 = vcmask 1043456   ;;  %v554_v51 = vld [vmem:[%s2121_s3] sm:$0xf]  ;;  %vm1223_vm4 = vcmask 523264  }
  0x39   : > { %1458 = vmatpush3.bf16.msra.mxu1 %v1622_v1  ;;  %s1754_s11 = smov 64   ;;  %s1756_s21 = smov 112   ;;  %v718_v52 = vsel %vm509_vm3, %v554_v51, 0  ;;  %v667_v53 = vld [vmem:[%s2121_s3 + $0x4] sm:$0xf] }
  0x3a   : > { %s1386_s25 = sshll.u32 %s367_s27, 3  ;;  %1459 = vmatprep.subr.bf16.mxu1 %v1749_v0  ;;  %s1751_s27 = smov 120   ;;  %v672_v54 = vsel %vm509_vm3, %v667_v53, 0 }
  0x3b   : > { %s1757_s26 = smov 80   ;;  %s1419_s18 = sshll.u32 %s1839_s17, 7 }
  0x3c   : > { %s369_s20 = scalar_lea.vmem %s2140_s0, %s1386_s25  ;;  %s1752_s25 = smov 96  }
  0x3d   : > { %v1918_v3 = vld [vmem:[%s369_s20] sm:$0xff]  ;;  %1460 = vmatpush3.bf16.msra.mxu1 %v1623_v2  ;;  %s1755_s20 = smov 56   ;;  %s2075_s0 = scalar_lea.hbm %s2128_s10, %s1419_s18 }
  0x3e   : > { %v372_v4 = vpack.c.bf16 %v1918_v3, %v1918_v3  ;;  %1465 = vmatprep.subr.bf16.mxu1 %v1749_v0  ;;  %p2141_p9 = scmp.ne.s32.totalorder %s2133_s23, 0  ;;  %s1762_s17 = smov [#allocation5]  }
  0x40   : > { %1462 = vmatmul.mubr.msk.bf16.vlgmr.msra.gmra.mrb[0].mxu1 %vm396_vm1, %v372_v4 }
  0x41   : > { %1467 = vmatprep.mubr.msk.bf16.mxu1 %vm1750_vm0, %v1749_v0 }
 0x113   : > { %v434_v6 = vpop.f32.mrb[0].mxu1 }
 0x114   : > { %v435_v7 = vadd.f32 %v1387_v5, %v434_v6  ;;  %v1463_v8 = vpop.f32.mrb[1].mxu1 }
 0x115   : > { %v437_v9 = vpop.f32.mrb[2].mxu1 }
 0x116   : > { %v1930_v10 = vpack.c.bf16 %v435_v7, %v435_v7  ;;  %v1464_v11 = vpop.f32.mrb[3].mxu1 }
 0x118   : > { %555 = vrot.lane.b32.xlu1 %v1930_v10, %s1751_s27  ;;  %442 = vrot.lane.b32.xlu0 %v1930_v10, %s1752_s25  ;;  %s1758_s27 = smov 72   ;;  %s1759_s25 = smov 104  }
 0x11c   : > { %557 = vrot.lane.b32.xlu0 %v1930_v10, %s1753_s28  ;;  %s1760_s28 = smov 48  }
 0x18a   : > { %v443_v12 = vpop.permute.xlu0 %442  ;;  %v556_v16 = vpop.permute.xlu1 %555 }
 0x18b   : > { %v449_v13 = vsel %vm444_vm2, %v443_v12, 0 }
 0x18c   : > { %1466 = vmatpush3.bf16.xpose.msra.mxu1 %v449_v13 }
 0x18d   : > { %1477 = vmatprep.subr.bf16.mxu1 %v1749_v0 }
 0x18e   : > { %v558_v14 = vpop.permute.xlu0 %557 }
 0x18f   : > { %v563_v15 = vsel %vm444_vm2, %v558_v14, 0 }
 0x193   : > { %1468 = vmatmul.mubr.msk.bf16.vlgmr.msra.gmra.mrb[4].mxu1 %vm444_vm2, %v1930_v10 }
 0x194   : > { %1478 = vmatpush3.bf16.xpose.msra.mxu1 %v563_v15  ;;  %1479 = vmatprep.mubr.msk.bf16.mxu1 %vm1750_vm0, %v1749_v0 }
 0x195   : > { %1489 = vmatprep.subr.bf16.mxu1 %v1749_v0 }
 0x19b   : > { %1480 = vmatmul.mubr.msk.bf16.vlgmr.msra.gmra.mrb[8].mxu1 %vm444_vm2, %v556_v16 }
 0x19c   : > { %1491 = vmatprep.mubr.msk.bf16.mxu1 %vm1750_vm0, %v1749_v0  ;;  %1490 = vmatpush3.bf16.msra.mxu1 %v672_v54 }
 0x19d   : > { %1501 = vmatprep.subr.bf16.mxu1 %v1749_v0 }
 0x266   : > { %v485_v17 = vpop.f32.mrb[4].mxu1 }
 0x267   : > { %v491_v18 = vmul.f32 0.35355338, %v485_v17  ;;  %v1469_v19 = vpop.f32.mrb[5].mxu1 }
 0x268   : > { %v488_v20 = vpop.f32.mrb[6].mxu1 }
 0x269   : > { %v1470_v21 = vpop.f32.mrb[7].mxu1  ;;  %v492_v22 = vsel %vm444_vm2, %v491_v18, -inf }
 0x26a   : > { %493 = vmax.xlane.f32.xlu1 %v492_v22 }
 0x26e   : > { %v599_v23 = vpop.f32.mrb[8].mxu1 }
 0x26f   : > { %v605_v24 = vmul.f32 0.35355338, %v599_v23  ;;  %v1481_v25 = vpop.f32.mrb[9].mxu1 }
 0x270   : > { %v602_v26 = vpop.f32.mrb[10].mxu1 }
 0x271   : > { %v1482_v27 = vpop.f32.mrb[11].mxu1  ;;  %v606_v28 = vsel %vm444_vm2, %v605_v24, -inf }
 0x272   : > { %607 = vmax.xlane.f32.xlu0 %v606_v28 }
 0x2f7   : > { %v494_v29 = vpop.xlane.xlu1 %493 }
 0x2f8   : > { %v495_v30 = vsub.f32 %v491_v18, %v494_v29 }
 0x2fa   : > { %v496_v31 = vmul.f32 1.442695, %v495_v30 }
 0x2fc   : > { %1630 = vpow2.f32 %v496_v31 }
 0x2ff   : > { %v608_v32 = vpop.xlane.xlu0 %607 }
 0x300   : > { %v609_v33 = vsub.f32 %v605_v24, %v608_v32 }
 0x302   : > { %v610_v34 = vmul.f32 1.442695, %v609_v33 }
 0x304   : > { %1632 = vpow2.f32 %v610_v34 }
 0x306   : > { %v1631_v35 = vpop.eup %1630 }
 0x307   : > { %v498_v36 = vsel %vm444_vm2, %v1631_v35, 0.0 }
 0x308   : > { %499 = vadd.xlane.f32.xlu0 %v498_v36  ;;  %v872_v36 = vld [vmem:[%s2121_s3 + $0x8] sm:$0xf] }
 0x30e   : > { %v1633_v37 = vpop.eup %1632 }
 0x30f   : > { %v612_v38 = vsel %vm444_vm2, %v1633_v37, 0.0 }
 0x310   : > { %613 = vadd.xlane.f32.xlu1 %v612_v38 }
 0x31e   : > { %504 = vrot.lane.b32.xlu0 %v1930_v10, %s1754_s11 }
 0x321   : > { %618 = vrot.lane.b32.xlu1 %v1930_v10, %s1755_s20  ;;  %s363_s20 = sand.u32 1, %s1736_s14  }
 0x322   : > { %760 = vrot.lane.b32.xlu0 %v1930_v10, %s1756_s21  ;;  %s1761_s21 = smov 40  }
 0x325   : > { %762 = vrot.lane.b32.xlu1 %v1930_v10, %s1757_s26  ;;  %s1295_s26 = scalar_lea.sflag [#allocation4], %s363_s20 }
 0x395   : > { %v500_v39 = vpop.xlane.xlu0 %499 }
 0x396   : > { %1634 = vrcp.f32 %v500_v39 }
 0x399   : > { %v505_v40 = vpop.permute.xlu0 %504 }
 0x39a   : > { %v511_v41 = vsel %vm509_vm3, %v505_v40, 0 }
 0x39b   : > { %1472 = vmatpush3.bf16.msra.mxu0 %v511_v41 }
 0x39c   : > { %1483 = vmatprep.subr.bf16.mxu0 %v1749_v0 }
 0x39d   : > { %v614_v42 = vpop.xlane.xlu1 %613  ;;  %v761_v5 = vpop.permute.xlu0 %760 }
 0x39e   : > { %1636 = vrcp.f32 %v614_v42 }
 0x3a0   : > { %v1635_v43 = vpop.eup %1634 }
 0x3a1   : > { %v502_v44 = vmul.f32 %v1635_v43, %v1631_v35  ;;  %v619_v45 = vpop.permute.xlu1 %618 }
 0x3a2   : > { %v624_v47 = vsel %vm509_vm3, %v619_v45, 0 }
 0x3a3   : > { %v503_v46 = vpack.c.bf16 %v502_v44, %v502_v44 }
 0x3a5   : > { %1474 = vmatmul.mubr.msk.bf16.vlgmr.msra.gmra.mrb[0].mxu0 %vm444_vm2, %v503_v46  ;;  %v763_v60 = vpop.permute.xlu1 %762 }
 0x3a6   : > { %1484 = vmatpush3.bf16.msra.mxu0 %v624_v47  ;;  %1485 = vmatprep.mubr.msk.bf16.mxu0 %vm1750_vm0, %v1749_v0  ;;  %v768_v2 = vsel %vm444_vm2, %v763_v60, 0 }
 0x3a7   : > { %1495 = vmatprep.subr.bf16.mxu0 %v1749_v0 }
 0x3a8   : > { %v1637_v48 = vpop.eup %1636 }
 0x3a9   : > { %v616_v49 = vmul.f32 %v1637_v48, %v1633_v37  ;;  %v877_v37 = vsel %vm509_vm3, %v872_v36, 0 }
 0x3ab   : > { %v617_v50 = vpack.c.bf16 %v616_v49, %v616_v49 }
 0x3ad   : > { %1486 = vmatmul.mubr.msk.bf16.vlgmr.msra.gmra.mrb[4].mxu0 %vm444_vm2, %v617_v50 }
 0x3ae   : > { %1497 = vmatprep.mubr.msk.bf16.mxu0 %vm1750_vm0, %v1749_v0  ;;  %1496 = vmatpush3.bf16.msra.mxu0 %v718_v52 }
 0x3af   : > { %1507 = vmatprep.subr.bf16.mxu0 %v1749_v0 }
 0x478   : > { %v547_v55 = vpop.f32.mrb[0].mxu0 }
 0x479   : > { %v553_v56 = vpack.c.bf16 %v547_v55, %v547_v55  ;;  %v1475_v57 = vpop.f32.mrb[1].mxu0 }
 0x47a   : > { %v550_v58 = vpop.f32.mrb[2].mxu0 }
 0x47b   : > { %v1476_v59 = vpop.f32.mrb[3].mxu0  ;;  %1498 = vmatmul.mubr.msk.bf16.vlgmr.msra.gmra.mrb[8].mxu0 %vm444_vm2, %v553_v56  ;;  %v1032_v56 = vld [vmem:[%s2121_s3 + $0xc] sm:$0xf] }
 0x47c   : > { %1509 = vmatprep.mubr.msk.bf16.mxu0 %vm1750_vm0, %v1749_v0 }
 0x480   : > { %v660_v61 = vpop.f32.mrb[4].mxu0 }
 0x481   : > { %v666_v62 = vpack.c.bf16 %v660_v61, %v660_v61  ;;  %v1487_v63 = vpop.f32.mrb[5].mxu0 }
 0x482   : > { %v663_v1 = vpop.f32.mrb[6].mxu0 }
 0x483   : > { %v1488_v4 = vpop.f32.mrb[7].mxu0  ;;  %1492 = vmatmul.mubr.msk.bf16.vlgmr.msra.gmra.mrb[12].mxu1 %vm444_vm2, %v666_v62 }
 0x484   : > { %1502 = vmatpush3.bf16.xpose.msra.mxu1 %v768_v2  ;;  %1503 = vmatprep.mubr.msk.bf16.mxu1 %vm1750_vm0, %v1749_v0 }
 0x485   : > { %1513 = vmatprep.subr.bf16.mxu1 %v1749_v0 }
 0x48b   : > { %1504 = vmatmul.mubr.msk.bf16.vlgmr.msra.gmra.mrb[16].mxu1 %vm444_vm2, %v761_v5 }
 0x48c   : > { %1515 = vmatprep.mubr.msk.bf16.mxu1 %vm1750_vm0, %v1749_v0  ;;  %1514 = vmatpush3.bf16.msra.mxu1 %v877_v37  ;;  %v1628_v37 = vld [vmem:[%s2126_s8 + $0x10] sm:$0xff]  }
 0x48d   : > { %1525 = vmatprep.subr.bf16.mxu1 %v1749_v0 }
 0x54e   : > { %v754_v6 = vpop.f32.mrb[8].mxu0 }
 0x54f   : > { %v1499_v7 = vpop.f32.mrb[9].mxu0 }
 0x550   : > { %v757_v8 = vpop.f32.mrb[10].mxu0 }
 0x551   : > { %v1500_v9 = vpop.f32.mrb[11].mxu0 }
 0x556   : > { %v708_v11 = vpop.f32.mrb[12].mxu1 }
 0x557   : > { %v1985_v12 = vadd.f32 %v754_v6, %v708_v11  ;;  %v1493_v13 = vpop.f32.mrb[13].mxu1  ;;  %v1403_v11 = vld [vmem:[%s2122_s4] ss:$0 sm:$0xff] }
 0x558   : > { %v711_v14 = vpop.f32.mrb[14].mxu1 }
 0x559   : > { %v1494_v15 = vpop.f32.mrb[15].mxu1 }
 0x55e   : > { %v804_v16 = vpop.f32.mrb[16].mxu1 }
 0x55f   : > { %v810_v17 = vmul.f32 0.35355338, %v804_v16  ;;  %v1505_v18 = vpop.f32.mrb[17].mxu1 }
 0x560   : > { %v807_v19 = vpop.f32.mrb[18].mxu1 }
 0x561   : > { %v1506_v20 = vpop.f32.mrb[19].mxu1  ;;  %v811_v21 = vsel %vm444_vm2, %v810_v17, -inf }
 0x562   : > { %812 = vmax.xlane.f32.xlu1 %v811_v21 }
 0x573   : > { %922 = vrot.lane.b32.xlu1 %v1930_v10, %s1758_s27 }
 0x577   : > { %920 = vrot.lane.b32.xlu1 %v1930_v10, %s1759_s25 }
 0x5ef   : > { %v813_v22 = vpop.xlane.xlu1 %812 }
 0x5f0   : > { %v814_v23 = vsub.f32 %v810_v17, %v813_v22 }
 0x5f2   : > { %v815_v24 = vmul.f32 1.442695, %v814_v23 }
 0x5f3   : > { %v923_v32 = vpop.permute.xlu1 %922 }
 0x5f4   : > { %1638 = vpow2.f32 %v815_v24  ;;  %v928_v34 = vsel %vm444_vm2, %v923_v32, 0  ;;  %v1624_v24 = vld [vmem:[#allocation2] sm:$0xff]  }
 0x5f7   : > { %v921_v35 = vpop.permute.xlu1 %920 }
 0x5fe   : > { %v1639_v25 = vpop.eup %1638 }
 0x5ff   : > { %v817_v26 = vsel %vm444_vm2, %v1639_v25, 0.0 }
 0x600   : > { %818 = vadd.xlane.f32.xlu0 %v817_v26  ;;  %v1627_v26 = vld [vmem:[%s2126_s8 + $0x8] sm:$0xff]  }
 0x616   : > { %823 = vrot.lane.b32.xlu0 %v1930_v10, %s1760_s28 }
 0x68d   : > { %v819_v27 = vpop.xlane.xlu0 %818 }
 0x68e   : > { %1640 = vrcp.f32 %v819_v27 }
 0x691   : > { %v824_v28 = vpop.permute.xlu0 %823 }
 0x692   : > { %v829_v29 = vsel %vm509_vm3, %v824_v28, 0 }
 0x693   : > { %1508 = vmatpush3.bf16.msra.mxu0 %v829_v29 }
 0x694   : > { %1519 = vmatprep.subr.bf16.mxu0 %v1749_v0 }
 0x698   : > { %v1641_v30 = vpop.eup %1640 }
 0x699   : > { %v821_v31 = vmul.f32 %v1641_v30, %v1639_v25  ;;  %v1625_v25 = vld [vmem:[#allocation2 + $0x8] sm:$0xff]  }
 0x69b   : > { %v822_v33 = vpack.c.bf16 %v821_v31, %v821_v31  ;;  %v1404_v31 = vld [vmem:[%s2123_s5] ss:$0 sm:$0xff] }
 0x69d   : > { %1510 = vmatmul.mubr.msk.bf16.vlgmr.msra.gmra.mrb[12].mxu0 %vm444_vm2, %v822_v33  ;;  %v1405_v33 = vld [vmem:[%s2123_s5 + $0x1] ss:$0 sm:$0xff] }
 0x69e   : > { %1520 = vmatpush3.bf16.xpose.msra.mxu0 %v928_v34  ;;  %1521 = vmatprep.mubr.msk.bf16.mxu0 %vm1750_vm0, %v1749_v0 }
 0x69f   : > { %1531 = vmatprep.subr.bf16.mxu0 %v1749_v0 }
 0x6a5   : > { %1522 = vmatmul.mubr.msk.bf16.vlgmr.msra.gmra.mrb[16].mxu0 %vm444_vm2, %v921_v35 }
 0x6a6   : > { %1533 = vmatprep.mubr.msk.bf16.mxu0 %vm1750_vm0, %v1749_v0 }
 0x770   : > { %v865_v38 = vpop.f32.mrb[12].mxu0 }
 0x771   : > { %v871_v39 = vpack.c.bf16 %v865_v38, %v865_v38  ;;  %v1511_v40 = vpop.f32.mrb[13].mxu0  ;;  %v1629_v38 = vld [vmem:[%s2126_s8 + $0x18] sm:$0xff]  }
 0x772   : > { %v868_v41 = vpop.f32.mrb[14].mxu0 }
 0x773   : > { %v1512_v42 = vpop.f32.mrb[15].mxu0  ;;  %1516 = vmatmul.mubr.msk.bf16.vlgmr.msra.gmra.mrb[20].mxu1 %vm444_vm2, %v871_v39  ;;  %v1406_v39 = vld [vmem:[%s2125_s7] ss:$0 sm:$0xff] }
 0x774   : > { %1527 = vmatprep.mubr.msk.bf16.mxu1 %vm1750_vm0, %v1749_v0 }
 0x778   : > { %v964_v43 = vpop.f32.mrb[16].mxu0 }
 0x779   : > { %v970_v44 = vmul.f32 0.35355338, %v964_v43  ;;  %v1523_v45 = vpop.f32.mrb[17].mxu0 }
 0x77a   : > { %v967_v46 = vpop.f32.mrb[18].mxu0 }
 0x77b   : > { %v1524_v47 = vpop.f32.mrb[19].mxu0  ;;  %v971_v48 = vsel %vm444_vm2, %v970_v44, -inf }
 0x77c   : > { %972 = vmax.xlane.f32.xlu0 %v971_v48 }
 0x792   : > { %983 = vrot.lane.b32.xlu0 %v1930_v10, %s1761_s21  ;;  %v1037_v10 = vsel %vm509_vm3, %v1032_v56, 0  ;;  %s1385_s21 = sshll.u32 %s363_s20, 3 }
 0x793   : > { %1532 = vmatpush3.bf16.msra.mxu0 %v1037_v10  ;;  %s365_s27 = scalar_lea.vmem [#allocation5], %s1385_s21  ;;  %s1682_s21 = sshll.u32 %s1762_s17, 4  ;;  %s1683_s21 = int_to_ptr.vmem [resolvable:$false] %s1682_s21 }
 0x794   : > { %1545 = vmatprep.subr.bf16.mxu0 %v1749_v0  ;;  %s1308_s25 = sshll.u32 %s365_s27, 4  ;;  %s1684_s30 = scalar_lea.vmem %s1683_s21, 256  ;;  %s2077_s25 = int_to_ptr.vmem [resolvable:$true] %s1308_s25 }
 0x795   : > { %s1678_s29 = scalar_lea.vmem %s2077_s25, 128  ;;  %p1685_p2 = scmp.lt.s32.totalorder %s2077_s25, %s1683_s21 }
 0x796   : > { %p1679_p6 = scmp.ne.s32.totalorder %s2077_s25, %s1678_s29  ;;  %p1686_p3 = scmp.lt.s32.totalorder %s1684_s30, %s1678_s29 }
 0x798   : > { %p1680_p10 = pnand %p1679_p6, %p2141_p9  ;;  %p1687_p4 = por %p1686_p3, %p1685_p2 }
 0x79a   : > { %p1681_p12 = pneg %p1680_p10 }
 0x79c   : > { %p1688_p7 = pnand %p1687_p4, %p1681_p12 }
 0x809   : > { %v973_v49 = vpop.xlane.xlu0 %972 }
 0x80a   : > { %v974_v50 = vsub.f32 %v970_v44, %v973_v49 }
 0x80c   : > { %v975_v51 = vmul.f32 1.442695, %v974_v50 }
 0x80d   : > { %v984_v52 = vpop.permute.xlu0 %983 }
 0x80e   : > { %1642 = vpow2.f32 %v975_v51  ;;  %v989_v53 = vsel %vm509_vm3, %v984_v52, 0 }
 0x80f   : > { %1526 = vmatpush3.bf16.msra.mxu1 %v989_v53 }
 0x810   : > { %1537 = vmatprep.subr.bf16.mxu1 %v1749_v0 }
 0x818   : > { %v1643_v54 = vpop.eup %1642 }
 0x819   : > { %v977_v55 = vsel %vm444_vm2, %v1643_v54, 0.0 }
 0x81a   : > { %978 = vadd.xlane.f32.xlu1 %v977_v55 }
 0x846   : > { %v913_v57 = vpop.f32.mrb[20].mxu1 }
 0x847   : > { %v919_v58 = vadd.f32 %v913_v57, %v1985_v12  ;;  %v1517_v59 = vpop.f32.mrb[21].mxu1 }
 0x848   : > { %v916_v60 = vpop.f32.mrb[22].mxu1 }
 0x849   : > { %v1518_v61 = vpop.f32.mrb[23].mxu1 }
 0x8a7   : > { %v979_v62 = vpop.xlane.xlu1 %978 }
 0x8a8   : > { %1644 = vrcp.f32 %v979_v62  ;;  %v1416_v62 = vld [vmem:[%s2123_s5 + $0x2] ss:$0 sm:$0xff] }
 0x8b2   : > { %v1645_v63 = vpop.eup %1644 }
 0x8b3   : > { %v981_v1 = vmul.f32 %v1645_v63, %v1643_v54 }
 0x8b5   : > { %v982_v2 = vpack.c.bf16 %v981_v1, %v981_v1  ;;  %v1417_v1 = vld [vmem:[%s2123_s5 + $0x3] ss:$0 sm:$0xff] }
 0x8b7   : > { %1528 = vmatmul.mubr.msk.bf16.vlgmr.msra.gmra.mrb[24].mxu1 %vm444_vm2, %v982_v2 }
 0x8b8   : > { %1541 = vmatprep.mubr.msk.bf16.mxu1 %vm1750_vm0, %v1749_v0  ;;  %1538 = vmatpush3.bf16.msra.mxu1 %v1624_v24 }
 0x8b9   : > { %1539 = vmatprep.subr.bf16.mxu1 %v1749_v0 }
 0x8bc   : > { %1540 = vmatpush3.bf16.msra.mxu1 %v1625_v25 }
 0x98a   : > { %v1025_v4 = vpop.f32.mrb[24].mxu1 }
 0x98b   : > { %v1031_v5 = vpack.c.bf16 %v1025_v4, %v1025_v4  ;;  %v1529_v6 = vpop.f32.mrb[25].mxu1 }
 0x98c   : > { %v1028_v7 = vpop.f32.mrb[26].mxu1 }
 0x98d   : > { %v1530_v8 = vpop.f32.mrb[27].mxu1  ;;  %1534 = vmatmul.mubr.msk.bf16.vlgmr.msra.gmra.mrb[20].mxu0 %vm444_vm2, %v1031_v5 }
 0x98e   : > { %1553 = vmatprep.mubr.msk.bf16.mxu0 %vm1750_vm0, %v1749_v0 }
 0xa60   : > { %v1073_v9 = vpop.f32.mrb[20].mxu0 }
 0xa61   : > { %v1079_v12 = vadd.f32 %v1073_v9, %v919_v58  ;;  %v1535_v13 = vpop.f32.mrb[21].mxu0 }
 0xa62   : > { %v1076_v14 = vpop.f32.mrb[22].mxu0 }
 0xa63   : > { %v1087_v15 = vadd.f32 %v1403_v11, %v1079_v12  ;;  %v1536_v16 = vpop.f32.mrb[23].mxu0 }
 0xa65   : > { %v1088_v17 = vadd.f32 %v1087_v15, %v1918_v3  ;;  %v1626_v3 = vld [vmem:[%s2126_s8] sm:$0xff]  }
 0xa66   : > { %1546 = vmatpush3.bf16.msra.mxu0 %v1626_v3 }
 0xa67   : > { %v1089_v18 = vsel %vm396_vm1, %v1088_v17, 0.0  ;;  %1547 = vmatprep.subr.bf16.mxu0 %v1749_v0 }
 0xa68   : > { %1090 = vadd.xlane.f32.xlu1 %v1089_v18 }
 0xa6a   : > { %1548 = vmatpush3.bf16.msra.mxu0 %v1627_v26 }
 0xa6b   : > { %1549 = vmatprep.subr.bf16.mxu0 %v1749_v0 }
 0xa6e   : > { %1550 = vmatpush3.bf16.msra.mxu0 %v1628_v37 }
 0xa6f   : > { %1551 = vmatprep.subr.bf16.mxu0 %v1749_v0  ;;  %v1410_v0 = vld [vmem:[%s2127_s9] ss:$0 sm:$0xff] }
 0xa72   : > { %1552 = vmatpush3.bf16.msra.mxu0 %v1629_v38 }
 0xaf5   : > { %v1091_v19 = vpop.xlane.xlu1 %1090 }
 0xaf6   : > { %v1093_v20 = vmul.f32 0.03125, %v1091_v19 }
 0xaf8   : > { %v1094_v21 = vsub.f32 %v1088_v17, %v1093_v20 }
 0xafa   : > { %v1095_v22 = vmul.f32 %v1094_v21, %v1094_v21 }
 0xafc   : > { %v1096_v23 = vsel %vm396_vm1, %v1095_v22, 0.0 }
 0xafd   : > { %1097 = vadd.xlane.f32.xlu1 %v1096_v23 }
 0xb8a   : > { %v1098_v27 = vpop.xlane.xlu1 %1097 }
 0xb8b   : > { %v1099_v28 = vmul.f32 0.03125, %v1098_v27 }
 0xb8d   : > { %v1100_v29 = vadd.f32 1e-05, %v1099_v28 }
 0xb8f   : > { %1646 = vrsqrt.f32 %v1100_v29 }
 0xb99   : > { %v1647_v30 = vpop.eup %1646 }
 0xb9a   : > { %v1102_v32 = vmul.f32 %v1647_v30, %v1094_v21 }
 0xb9c   : > { %v1108_v34 = vmul.f32 %v1404_v31, %v1102_v32 }
 0xb9e   : > { %v1114_v35 = vadd.f32 %v1405_v33, %v1108_v34 }
 0xba0   : > { %v1115_v36 = vpack.c.bf16 %v1114_v35, %v1114_v35 }
 0xba2   : > { %1542 = vmatmul.mubr.msk.bf16.vlgmr.msra.gmra.mrb[28].mxu1 %vm396_vm1, %v1115_v36 }
 0xc75   : > { %v1176_v40 = vpop.f32.mrb[28].mxu1 }
 0xc76   : > { %v1177_v41 = vadd.f32 %v1406_v39, %v1176_v40  ;;  %v1543_v42 = vpop.f32.mrb[29].mxu1 }
 0xc77   : > { %v1179_v43 = vpop.f32.mrb[30].mxu1 }
 0xc78   : > { %v1182_v44 = vmax.f32 %v1177_v41, 0.0  ;;  %v1544_v45 = vpop.f32.mrb[31].mxu1 }
 0xc7a   : > { %v1183_v46 = vpack.c.bf16 %v1182_v44, %v1182_v44 }
 0xc7c   : > { %1554 = vmatmul.mubr.msk.bf16.vlgmr.msra.gmra.mrb[24].mxu0 %vm1223_vm4, %v1183_v46 }
 0xd4f   : > { %v1261_v47 = vpop.f32.mrb[24].mxu0 }
 0xd50   : > { %v1262_v48 = vadd.f32 %v1410_v0, %v1261_v47  ;;  %v1555_v49 = vpop.f32.mrb[25].mxu0 }
 0xd51   : > { %v1264_v50 = vpop.f32.mrb[26].mxu0 }
 0xd52   : > { %v1556_v51 = vpop.f32.mrb[27].mxu0  ;;  %v1267_v52 = vadd.f32 %v1262_v48, %v1114_v35 }
 0xd54   : > { %v1268_v53 = vsel %vm396_vm1, %v1267_v52, 0.0 }
 0xd55   : > { %1269 = vadd.xlane.f32.xlu1 %v1268_v53 }
 0xde2   : > { %v1270_v54 = vpop.xlane.xlu1 %1269 }
 0xde3   : > { %v1271_v55 = vmul.f32 0.03125, %v1270_v54 }
 0xde5   : > { %v1272_v56 = vsub.f32 %v1267_v52, %v1271_v55 }
 0xde7   : > { %v1273_v10 = vmul.f32 %v1272_v56, %v1272_v56 }
 0xde9   : > { %v1274_v57 = vsel %vm396_vm1, %v1273_v10, 0.0 }
 0xdea   : > { %1275 = vadd.xlane.f32.xlu1 %v1274_v57 }
 0xe77   : > { %v1276_v58 = vpop.xlane.xlu1 %1275 }
 0xe78   : > { %v1277_v59 = vmul.f32 0.03125, %v1276_v58 }
 0xe7a   : > { %v1278_v60 = vadd.f32 1e-05, %v1277_v59 }
 0xe7c   : > { %1648 = vrsqrt.f32 %v1278_v60 }
 0xe86   : > { %v1649_v61 = vpop.eup %1648 }
 0xe87   : > { %v1280_v63 = vmul.f32 %v1649_v61, %v1272_v56 }
 0xe89   : > { %v1286_v2 = vmul.f32 %v1416_v62, %v1280_v63 }
 0xe8b   : > { %v1292_v4 = vadd.f32 %v1417_v1, %v1286_v2 }
 0xe8d   : > { %1293 = vst.msk [vmem:[%s365_s27] sm:$0xff] %vm396_vm1, %v1292_v4 }
 0xe8e   : > { %1691 = shalt.err (!%p1688_p7)
}
 0xe8f   : > { %s1692_s20 = scalar_lea.hbm %s2075_s0, 128  ;;  %s1696_s27 = scalar_lea.hbm %s2128_s10, 256 }
 0xe90   : > { %p1693_p8 = scmp.ne.s32.totalorder %s2075_s0, %s1692_s20  ;;  %p1697_p1 = scmp.lt.u32.totalorder %s2075_s0, %s2128_s10 }
 0xe91   : > { %p1698_p0 = scmp.lt.u32.totalorder %s1696_s27, %s1692_s20  ;;  %p1700_p6 = scmp.lt.u32.totalorder %s1692_s20, %s2075_s0 }
 0xe92   : > { %p1694_p11 = pnand %p1693_p8, %p2141_p9 }
 0xe93   : > { %p1699_p5 = por %p1698_p0, %p1697_p1 }
 0xe94   : > { %p1695_p13 = pneg %p1694_p11 }
 0xe95   : > { %p1701_p10 = por %p1700_p6, %p1699_p5 }
 0xe97   : > { %p1702_p12 = pnand %p1701_p10, %p1695_p13 }
 0xe99   : > { %1705 = shalt.err (!%p1702_p12)
}
 0xe9a   : > { %1561 = dma.vmem_to_hbm [thread:$0]  (%p2141_p9), %s2077_s25, 128, %s2075_s0, %s1295_s26  }
 0xe9b PF: > { %p1573_p2 = scmp.ge.s32.totalorder %s1744_s16, 2  ;;  %s1320_s29 = sand.u32 1, %s1732_s13  }
 0xe9c   : > { %p2142_p3 = scmp.ne.s32.totalorder %s2134_s24, 0  ;;  %s1321_s17 = scalar_lea.sflag [#allocation4], %s1320_s29 }
 0xe9e   : > { %p1568_p4 = pnand %p1573_p2, %p2142_p3 }
 0xea0   : > { %1727 = dma.done.wait (!%p1568_p4), %s1321_s17, 128  }
 0xea1   : > { %1729 = vsyncadd (!%p1568_p4), %s1321_s17, 4294967168  ;;  %p21_p7 = scmp.ge.s32.totalorder %s1843_s19, 4   ;;  %s2143_s13 = smov %s1736_s14 }
 0xea2   : > { %s2144_s14 = smov %s1740_s15  ;;  %s2145_s15 = smov %s1854_s22 }
 0xea3   : > { %s2146_s16 = smov %s1843_s19  ;;  %23 = sbr.rel (!%p21_p7) target bundleno = 6 (0x6), region = 100 }
 0xeaa   :  { %1326 = vsyncpa [#allocation3], 1 }
 0xeab   :  { %1328 = vsyncpa [#allocation3 + $0x1], 1 }
 0xeac   :  { %1329 = vsyncpa [#allocation4], 1 }
 0xead   :  { %1331 = vsyncpa [#allocation4 + $0x1], 1 }

</bundles_post_ra>
